<compile_context>
chip_gen: v7x
topology: tpu7x:2x2x1
jax: 0.10.0
libtpu: 0.0.40
codegen_flags: <defaults>
</compile_context>

<pallas_src>
import jax
import jax.numpy as jnp
from jax.experimental import pallas as pl
from jax.experimental.pallas import tpu as pltpu


def gcn_kernel(adj_ref, xk_ref, xi_ref, w_ref, b_ref, o_ref, acc_ref, deg_ref):
    # adj_ref: (TM, TK) bf16  -- adjacency tile, adj[i, j] = 1 iff edge j -> i
    # xk_ref:  (TK, Fin) bf16 -- neighbor-feature slab matching the K tile (matmul input)
    # xi_ref:  (TM, Fin) f32  -- row-aligned original features (zero-in-degree fallback)
    # w_ref:   (Fin, Fout_pad) f32 -- pre-transposed nn.Linear weight, lane-padded
    # b_ref:   (1, Fout_pad) f32
    # o_ref:   (TM, Fout_pad) f32
    # acc_ref: (TM, Fin) f32  -- neighbor-sum accumulator (VMEM scratch)
    # deg_ref: (TM, 1) f32    -- in-degree accumulator (VMEM scratch)
    k = pl.program_id(1)

    @pl.when(k == 0)
    def _():
        acc_ref[...] = jnp.zeros_like(acc_ref)
        deg_ref[...] = jnp.zeros_like(deg_ref)

    adj = adj_ref[...]                                                  # (TM, TK) bf16
    # message + sum reduce on the MXU, f32 accumulation
    acc_ref[...] += jnp.dot(adj, xk_ref[...],
                            preferred_element_type=jnp.float32)
    # fused in-degree reduction (XLU) while the adjacency tile is resident
    deg_ref[...] += jnp.sum(adj.astype(jnp.float32), axis=1, keepdims=True)

    @pl.when(k == pl.num_programs(1) - 1)
    def _():
        deg = deg_ref[...]                                              # (TM, 1)
        has_in = deg > 0.0
        inv_deg = pl.reciprocal(jnp.where(has_in, deg, 1.0), approx=True)
        # mean over mailbox; nodes with no incoming edges keep original h
        h_agg = jnp.where(has_in, acc_ref[...] * inv_deg, xi_ref[...])  # (TM, Fin) f32
        # Linear + ReLU, lane-dense (Fout padded to 128) store
        h = jnp.dot(h_agg, w_ref[...],
                    preferred_element_type=jnp.float32) + b_ref[...]
        o_ref[...] = jnp.maximum(h, 0.0)


def gcn_forward(adj, x, w, b, *, tile=128):
    """adj: (N,N) dense adjacency (adj[i,j]=1 iff edge j->i), x: (N,Fin),
    w: (Fin,Fout) (already transposed vs. torch weight), b: (Fout,)."""
    N, Fin = x.shape
    Fout = w.shape[1]

    LANE = 128
    fout_pad = max(LANE, ((Fout + LANE - 1) // LANE) * LANE)
    n_pad = ((N + tile - 1) // tile) * tile

    # Pad N (zero rows/cols: padded rows have deg 0 and are sliced off) and pad Fout
    # to a full 128-lane width for unmasked vector stores.
    adj_bf = jnp.zeros((n_pad, n_pad), jnp.bfloat16).at[:N, :N].set(
        adj.astype(jnp.bfloat16))
    x_f32 = jnp.zeros((n_pad, Fin), jnp.float32).at[:N, :].set(
        x.astype(jnp.float32))
    x_bf = x_f32.astype(jnp.bfloat16)
    w_p = jnp.zeros((Fin, fout_pad), jnp.float32).at[:, :Fout].set(
        w.astype(jnp.float32))
    b_p = jnp.zeros((1, fout_pad), jnp.float32).at[0, :Fout].set(
        b.astype(jnp.float32))

    grid = (n_pad // tile, n_pad // tile)  # (row tiles, K/neighbor tiles) - reduction last

    out = pl.pallas_call(
        gcn_kernel,
        out_shape=jax.ShapeDtypeStruct((n_pad, fout_pad), jnp.float32),
        grid_spec=pltpu.PrefetchScalarGridSpec(
            num_scalar_prefetch=0,
            grid=grid,
            in_specs=[
                pl.BlockSpec((tile, tile), lambda i, k: (i, k)),      # adj tile
                pl.BlockSpec((tile, Fin), lambda i, k: (k, 0)),       # x slab for K step (bf16)
                pl.BlockSpec((tile, Fin), lambda i, k: (i, 0)),       # row-aligned x (f32 fallback)
                pl.BlockSpec((Fin, fout_pad), lambda i, k: (0, 0)),   # weights (resident)
                pl.BlockSpec((1, fout_pad), lambda i, k: (0, 0)),     # bias (resident)
            ],
            out_specs=pl.BlockSpec((tile, fout_pad), lambda i, k: (i, 0)),
            scratch_shapes=[
                pltpu.VMEM((tile, Fin), jnp.float32),  # aggregation accumulator
                pltpu.VMEM((tile, 1), jnp.float32),    # in-degree accumulator
            ],
        ),
        compiler_params=pltpu.CompilerParams(
            dimension_semantics=("parallel", "arbitrary"),
            # For large N, raise vmem_limit_bytes and re-derive `tile` per chip
            # (v7x: 64 MiB physical VMEM; v5e/v6e: 128 MiB, 32 MiB default scoped).
        ),
    )(adj_bf, x_bf, x_f32, w_p, b_p)

    return out[:N, :Fout]


def reference_gcn(adj, x, w, b):
    # Pure f32 JAX reference of the DGL GCN forward.
    deg = jnp.sum(adj, axis=1, keepdims=True)
    agg = adj @ x
    has_in = deg > 0.0
    h_agg = jnp.where(has_in, agg / jnp.where(has_in, deg, 1.0), x)
    return jnp.maximum(h_agg @ w + b[None, :], 0.0)


if __name__ == "__main__":
    key = jax.random.PRNGKey(0)
    k_adj, k_x, k_w, k_b = jax.random.split(key, 4)

    # Small shapes: N nodes, in_feats -> out_feats (tile = 128 -> 2x2 grid)
    N, in_feats, out_feats = 256, 32, 32

    # Random directed graph; clear incoming edges of node 0 to exercise the
    # "no messages -> keep original feature" path.
    adj = (jax.random.uniform(k_adj, (N, N)) < 0.3).astype(jnp.float32)
    adj = adj.at[0, :].set(0.0)

    x = jax.random.normal(k_x, (N, in_feats), dtype=jnp.float32)

    # nn.Linear-style init: U(-1/sqrt(in_feats), 1/sqrt(in_feats))
    bound = 1.0 / (in_feats ** 0.5)
    w = jax.random.uniform(k_w, (in_feats, out_feats),
                           minval=-bound, maxval=bound, dtype=jnp.float32)
    b = jax.random.uniform(k_b, (out_feats,),
                           minval=-bound, maxval=bound, dtype=jnp.float32)

    out = gcn_forward(adj, x, w, b)
    out = jax.block_until_ready(out)

    ref = reference_gcn(adj, x, w, b)
    assert out.shape == (N, out_feats)
    # bf16 aggregation inputs + approx reciprocal -> slightly looser tolerance vs f32 ref
    assert jnp.allclose(out, ref, atol=3e-2, rtol=3e-2), (
        float(jnp.max(jnp.abs(out - ref))))

    print("KERNEL_OK")
</pallas_src>

<mosaic_0001>
module attributes {stable_mosaic.version = 11 : i64} {
  func.func @gcn_kernel(%arg0: i32, %arg1: i32, %arg2: memref<128x128xbf16, #tpu.memory_space<vmem>>, %arg3: memref<128x32xbf16, #tpu.memory_space<vmem>>, %arg4: memref<128x32xf32, #tpu.memory_space<vmem>>, %arg5: memref<32x128xf32, #tpu.memory_space<vmem>>, %arg6: memref<1x128xf32, #tpu.memory_space<vmem>>, %arg7: memref<128x128xf32, #tpu.memory_space<vmem>>, %arg8: memref<128x32xf32, #tpu.memory_space<vmem>>, %arg9: memref<128x1xf32, #tpu.memory_space<vmem>>) attributes {dimension_semantics = [#tpu.dimension_semantics<parallel>, #tpu.dimension_semantics<arbitrary>], iteration_bounds = array<i64: 2, 2>, scalar_prefetch = 0 : i64, scratch_operands = 2 : i64, tpu.core_type = #tpu.core_type<tc>, window_params = [{transform_indices = @transform_0, window_bounds = array<i64: 128, 128>}, {transform_indices = @transform_1, window_bounds = array<i64: 128, 32>}, {transform_indices = @transform_2, window_bounds = array<i64: 128, 32>}, {pipeline_mode = #tpu.pipeline_mode<synchronous>, transform_indices = @transform_3, window_bounds = array<i64: 32, 128>}, {pipeline_mode = #tpu.pipeline_mode<synchronous>, transform_indices = @transform_4, window_bounds = array<i64: 1, 128>}, {transform_indices = @transform_5, window_bounds = array<i64: 128, 128>}]} {
    %c0_i32 = arith.constant 0 : i32
    %0 = arith.cmpi eq, %arg1, %c0_i32 : i32
    %1 = arith.extui %0 : i1 to i32
    %c0_i32_0 = arith.constant 0 : i32
    %2 = arith.cmpi ne, %1, %c0_i32_0 : i32
    scf.if %2 {
      %cst_14 = arith.constant 0.000000e+00 : f32
      %18 = vector.broadcast %cst_14 : f32 to vector<128x32xf32>
      %c0_15 = arith.constant 0 : index
      %c0_16 = arith.constant 0 : index
      %19 = vector.load %arg8[%c0_15, %c0_16] : memref<128x32xf32, #tpu.memory_space<vmem>>, vector<128x32xf32>
      tpu.vector_store %arg8[%c0_15, %c0_16], %18 {strides = array<i32>} : memref<128x32xf32, #tpu.memory_space<vmem>>, vector<128x32xf32>,
      %cst_17 = arith.constant 0.000000e+00 : f32
      %20 = vector.broadcast %cst_17 : f32 to vector<128x1xf32>
      %c0_18 = arith.constant 0 : index
      %c0_19 = arith.constant 0 : index
      %21 = vector.load %arg9[%c0_18, %c0_19] : memref<128x1xf32, #tpu.memory_space<vmem>>, vector<128x1xf32>
      tpu.vector_store %arg9[%c0_18, %c0_19], %20 {strides = array<i32>} : memref<128x1xf32, #tpu.memory_space<vmem>>, vector<128x1xf32>,
    } else {
    }
    %c0 = arith.constant 0 : index
    %c0_1 = arith.constant 0 : index
    %3 = vector.load %arg2[%c0, %c0_1] : memref<128x128xbf16, #tpu.memory_space<vmem>>, vector<128x128xbf16>
    %c0_2 = arith.constant 0 : index
    %c0_3 = arith.constant 0 : index
    %4 = vector.load %arg8[%c0_2, %c0_3] : memref<128x32xf32, #tpu.memory_space<vmem>>, vector<128x32xf32>
    %c0_4 = arith.constant 0 : index
    %c0_5 = arith.constant 0 : index
    %5 = vector.load %arg3[%c0_4, %c0_5] : memref<128x32xbf16, #tpu.memory_space<vmem>>, vector<128x32xbf16>
    %cst = arith.constant dense<0.000000e+00> : vector<128x32xf32>
    %6 = tpu.matmul %3, %5, %cst {dimension_numbers = #tpu.dot_dimension_numbers<[1], [0], [0], [1], [0, 0, 1, 1], [], []>} : vector<128x128xbf16>, vector<128x32xbf16>, vector<128x32xf32> -> vector<128x32xf32>
    %7 = arith.addf %4, %6 : vector<128x32xf32>
    %c0_6 = arith.constant 0 : index
    %c0_7 = arith.constant 0 : index
    %8 = vector.load %arg8[%c0_6, %c0_7] : memref<128x32xf32, #tpu.memory_space<vmem>>, vector<128x32xf32>
    tpu.vector_store %arg8[%c0_6, %c0_7], %7 {strides = array<i32>} : memref<128x32xf32, #tpu.memory_space<vmem>>, vector<128x32xf32>,
    %c0_8 = arith.constant 0 : index
    %c0_9 = arith.constant 0 : index
    %9 = vector.load %arg9[%c0_8, %c0_9] : memref<128x1xf32, #tpu.memory_space<vmem>>, vector<128x1xf32>
    %10 = arith.extf %3 : vector<128x128xbf16> to vector<128x128xf32>
    %cst_10 = arith.constant dense<0.000000e+00> : vector<128xf32>
    %11 = vector.multi_reduction <add>, %10, %cst_10 [1] : vector<128x128xf32> to vector<128xf32>
    %12 = vector.shape_cast %11 : vector<128xf32> to vector<128x1xf32>
    %13 = arith.addf %9, %12 : vector<128x1xf32>
    %c0_11 = arith.constant 0 : index
    %c0_12 = arith.constant 0 : index
    %14 = vector.load %arg9[%c0_11, %c0_12] : memref<128x1xf32, #tpu.memory_space<vmem>>, vector<128x1xf32>
    tpu.vector_store %arg9[%c0_11, %c0_12], %13 {strides = array<i32>} : memref<128x1xf32, #tpu.memory_space<vmem>>, vector<128x1xf32>,
    %c1_i32 = arith.constant 1 : i32
    %15 = arith.cmpi eq, %arg1, %c1_i32 : i32
    %16 = arith.extui %15 : i1 to i32
    %c0_i32_13 = arith.constant 0 : i32
    %17 = arith.cmpi ne, %16, %c0_i32_13 : i32
    scf.if %17 {
      %c0_14 = arith.constant 0 : index
      %c0_15 = arith.constant 0 : index
      %18 = vector.load %arg9[%c0_14, %c0_15] : memref<128x1xf32, #tpu.memory_space<vmem>>, vector<128x1xf32>
      %cst_16 = arith.constant 0.000000e+00 : f32
      %19 = vector.broadcast %cst_16 : f32 to vector<128x1xf32>
      %20 = arith.cmpf ogt, %18, %19 : vector<128x1xf32>
      %cst_17 = arith.constant 1.000000e+00 : f32
      %21 = vector.broadcast %cst_17 : f32 to vector<128x1xf32>
      %22 = arith.select %20, %18, %21 : vector<128x1xi1>, vector<128x1xf32>
      %23 = tpu.reciprocal %22 {approx = true} : vector<128x1xf32> -> vector<128x1xf32>
      %c0_18 = arith.constant 0 : index
      %c0_19 = arith.constant 0 : index
      %24 = vector.load %arg8[%c0_18, %c0_19] : memref<128x32xf32, #tpu.memory_space<vmem>>, vector<128x32xf32>
      %25 = vector.broadcast %23 : vector<128x1xf32> to vector<128x32xf32>
      %26 = arith.mulf %24, %25 : vector<128x32xf32>
      %c0_20 = arith.constant 0 : index
      %c0_21 = arith.constant 0 : index
      %27 = vector.load %arg4[%c0_20, %c0_21] : memref<128x32xf32, #tpu.memory_space<vmem>>, vector<128x32xf32>
      %28 = vector.shape_cast %20 : vector<128x1xi1> to vector<128x1xi1>
      %29 = vector.broadcast %28 : vector<128x1xi1> to vector<128x32xi1>
      %30 = arith.select %29, %26, %27 : vector<128x32xi1>, vector<128x32xf32>
      %c0_22 = arith.constant 0 : index
      %c0_23 = arith.constant 0 : index
      %31 = vector.load %arg5[%c0_22, %c0_23] : memref<32x128xf32, #tpu.memory_space<vmem>>, vector<32x128xf32>
      %cst_24 = arith.constant dense<0.000000e+00> : vector<128x128xf32>
      %32 = tpu.matmul %30, %31, %cst_24 {dimension_numbers = #tpu.dot_dimension_numbers<[1], [0], [0], [1], [0, 0, 1, 1], [], []>} : vector<128x32xf32>, vector<32x128xf32>, vector<128x128xf32> -> vector<128x128xf32>
      %c0_25 = arith.constant 0 : index
      %c0_26 = arith.constant 0 : index
      %33 = vector.load %arg6[%c0_25, %c0_26] : memref<1x128xf32, #tpu.memory_space<vmem>>, vector<1x128xf32>
      %34 = vector.broadcast %33 : vector<1x128xf32> to vector<128x128xf32>
      %35 = arith.addf %32, %34 : vector<128x128xf32>
      %cst_27 = arith.constant 0.000000e+00 : f32
      %36 = vector.broadcast %cst_27 : f32 to vector<128x128xf32>
      %37 = arith.maximumf %35, %36 : vector<128x128xf32>
      %c0_28 = arith.constant 0 : index
      %c0_29 = arith.constant 0 : index
      %38 = vector.load %arg7[%c0_28, %c0_29] : memref<128x128xf32, #tpu.memory_space<vmem>>, vector<128x128xf32>
      tpu.vector_store %arg7[%c0_28, %c0_29], %37 {strides = array<i32>} : memref<128x128xf32, #tpu.memory_space<vmem>>, vector<128x128xf32>,
    } else {
    }
    return
  }
  func.func @transform_0(%arg0: i32, %arg1: i32) -> (i32, i32) {
    %c0_i32 = arith.constant 0 : i32
    return %arg0, %arg1 : i32, i32
  }
  func.func @transform_1(%arg0: i32, %arg1: i32) -> (i32, i32) {
    %c0_i32 = arith.constant 0 : i32
    %c0_i32_0 = arith.constant 0 : i32
    return %arg1, %c0_i32 : i32, i32
  }
  func.func @transform_2(%arg0: i32, %arg1: i32) -> (i32, i32) {
    %c0_i32 = arith.constant 0 : i32
    %c0_i32_0 = arith.constant 0 : i32
    return %arg0, %c0_i32 : i32, i32
  }
  func.func @transform_3(%arg0: i32, %arg1: i32) -> (i32, i32) {
    %c0_i32 = arith.constant 0 : i32
    %c0_i32_0 = arith.constant 0 : i32
    %c0_i32_1 = arith.constant 0 : i32
    return %c0_i32, %c0_i32_0 : i32, i32
  }
  func.func @transform_4(%arg0: i32, %arg1: i32) -> (i32, i32) {
    %c0_i32 = arith.constant 0 : i32
    %c0_i32_0 = arith.constant 0 : i32
    %c0_i32_1 = arith.constant 0 : i32
    return %c0_i32, %c0_i32_0 : i32, i32
  }
  func.func @transform_5(%arg0: i32, %arg1: i32) -> (i32, i32) {
    %c0_i32 = arith.constant 0 : i32
    %c0_i32_0 = arith.constant 0 : i32
    return %arg0, %c0_i32 : i32, i32
  }
}

</mosaic_0001>

<bundles_post_ra>
// kernel: tpu_custom_call.1
= control target key start
LH: loop header
LB: loop body
LE: loop exit
PB: predicated region body
PF: predicated region fallthrough
CT: control target
= control target key end

     0   :  { %s2352_s0 = inlined_call_operand.vmem [shape: bf16[256,256], index: 0, kind: input, shape index: {}]   ;;  %s2353_s1 = inlined_call_operand.vmem [shape: bf16[256,32], index: 1, kind: input, shape index: {}]   ;;  %s2354_s2 = inlined_call_operand.vmem [shape: f32[256,32], index: 2, kind: input, shape index: {}]   ;;  %s2355_s3 = inlined_call_operand.vmem [shape: f32[32,128], index: 3, kind: input, shape index: {}]   ;;  %s2356_s4 = inlined_call_operand.vmem [shape: f32[1,128], index: 4, kind: input, shape index: {}]   ;;  %s2357_s5 = inlined_call_operand.hbm [shape: f32[256,128], index: 5, kind: output, shape index: {}]  }
   0x1   :  { %2362 = sst [smem:[#allocation11_spill]] %s2352_s0 }
   0x2   :  { %10 = vsyncpa [#allocation6], 0 }
   0x3   :  { %12 = vsyncpa [#allocation6 + $0x1], 0  ;;  %s1925_s18 = smov 0   ;;  %s1927_s19 = smov 0  }
   0x4   :  { %s1929_s20 = smov 0   ;;  %s1931_s21 = smov 0  }
   0x5   :  { %s1933_s22 = smov 0   ;;  %s1935_s23 = smov 0  }
   0x6   :  { %s1937_s24 = smov 0   ;;  %s1939_s25 = smov 0  }
   0x7   :  { %s1941_s26 = smov 0   ;;  %s1943_s27 = smov 0  }
   0x8 LB: > { %2363 = sst [smem:[#allocation8_spill]] %s1884_s26  ;;  %s1444_s28 = sadd.s32 4294967295, %s1888_s27   ;;  %s1888_s27 = sphi %s1943_s27, %s18_s27   ;;  %s1884_s26 = sphi %s1941_s26, %s2373_s26   ;;  %s1880_s25 = sphi %s1939_s25, %s2380_s25   ;;  %s1876_s24 = sphi %s1937_s24, %s2371_s24   ;;  %s1872_s23 = sphi %s1935_s23, %s2379_s23   ;;  %s1868_s22 = sphi %s1933_s22, %s2378_s22   ;;  %s1864_s21 = sphi %s1931_s21, %s2377_s21   ;;  %s1860_s20 = sphi %s1929_s20, %s2376_s20   ;;  %s1856_s19 = sphi %s1927_s19, %s2375_s19   ;;  %s1852_s18 = sphi %s1925_s18, %s2374_s18  }
   0x9   : > { %s1445_s29 = sadd.s32 4294967294, %s1888_s27   ;;  %s27_s30 = sadd.s32 1, %s1880_s25 }
   0xa   : > { %s30_s6 = sadd.s32 1, %s1884_s26  ;;  %p28_p0 = scmp.ge.s32.totalorder %s27_s30, 2 }
   0xb   : > { %s39_s7 = sadd.s32 1, %s1868_s22  ;;  %p46_p1 = scmp.ne.s32.totalorder %s1868_s22, %s1864_s21 }
   0xc   : > { %p47_p2 = scmp.eq.s32.totalorder %s1888_s27, 0  ;;  %s2382_s30 = smov (%p28_p0, %s27_s30), 0 }
   0xd   : > { %2364 = sst [smem:[#allocation9_spill]] %s2382_s30  ;;  %s2384_s6 = smov (!%p28_p0, %s30_s6), %s1884_s26 }
   0xe   : > { %s35_s8 = ssub.s32 %s1880_s25, %s2382_s30  ;;  %p1988_p3 = por %p47_p2, %p46_p1 }
   0xf   : > { %p32_p4 = scmp.ge.s32.totalorder %s2384_s6, 2  ;;  %s159_s10 = sadd.s32 1, %s1860_s20 }
  0x10   : > { %p169_p5 = scmp.ne.s32.totalorder %s1860_s20, %s1856_s19  ;;  %p170_p6 = scmp.eq.s32.totalorder %s1444_s28, 3 }
  0x11   : > { %s2386_s6 = smov (%p32_p4, %s2384_s6), 0  ;;  %p175_p8 = scmp.ne.s32.totalorder %s1856_s19, %s1852_s18 }
  0x12   : > { %2366 = sst [smem:[#allocation10_spill]] %s2386_s6  ;;  %p1997_p7 = por %p170_p6, %p169_p5 }
  0x13   : > { %s34_s12 = ssub.s32 %s1884_s26, %s2386_s6  ;;  %p176_p9 = scmp.eq.s32.totalorder %s1445_s29, 3 }
  0x14   : > { %s36_s13 = sor.u32 %s35_s8, %s34_s12  ;;  %p157_p10 = scmp.eq.s32.totalorder %s34_s12, 0 }
  0x15   : > { %p37_p11 = scmp.eq.s32.totalorder %s36_s13, 0  ;;  %p2005_p12 = por %p176_p9, %p175_p8 }
  0x16   : > { %s2010_s15 = scalar_select %p157_p10, %s1860_s20, %s159_s10  }
  0x17   : > { %s2013_s16 = scalar_select %p37_p11, %s1868_s22, %s39_s7  }
  0x18   : > { %p1447_p13 = scmp.ge.s32.totalorder %s1888_s27, 4 }
  0x1a   : > { %198 = sbr.rel (%p1447_p13) target bundleno = 53 (0x35), region = 24 }
  0x21   : > { %201 = sbr.rel (!%p1988_p3) target bundleno = 53 (0x35), region = 28  ;;  %s203_s17 = sand.u32 (%p1988_p3), 1, %s1868_s22  }
  0x22   : > { %s1499_s28 = sshll.u32 (%p1988_p3), %s1884_s26, 5  ;;  %s1448_s29 = sshll.u32 (%p1988_p3), %s203_s17, 6 }
  0x23   : > { %s208_s8 = sadd.s32 (%p1988_p3), %s1880_s25, %s1499_s28  ;;  %s2369_s0 = sld [smem:[#allocation11_spill]] (%p1988_p3) }
  0x24   : > { %s1451_s12 = sshll.u32 (%p1988_p3), %s208_s8, 2  ;;  %s205_s7 = scalar_lea.vmem (%p1988_p3), [#allocation4], %s1448_s29 }
  0x29   : > { %s2024_s10 = scalar_lea.vmem %s2369_s0, %s1451_s12 }
  0x2a   : > { %v226_v0 = vld [vmem:[%s2024_s10] sm:$0xf]  ;;  %v228_v1 = vld [vmem:[%s2024_s10 + $0x8] sm:$0xf]  ;;  %v230_v2 = vld [vmem:[%s2024_s10 + $0x10] sm:$0xf] }
  0x2b   : > { %227 = vst [vmem:[%s205_s7] sm:$0xf] %v226_v0  ;;  %229 = vst [vmem:[%s205_s7 + $0x4] sm:$0xf] %v228_v1  ;;  %v232_v3 = vld [vmem:[%s2024_s10 + $0x18] sm:$0xf] }
  0x2c   : > { %231 = vst [vmem:[%s205_s7 + $0x8] sm:$0xf] %v230_v2  ;;  %v234_v4 = vld [vmem:[%s2024_s10 + $0x20] sm:$0xf]  ;;  %v236_v5 = vld [vmem:[%s2024_s10 + $0x28] sm:$0xf] }
  0x2d   : > { %233 = vst [vmem:[%s205_s7 + $0xc] sm:$0xf] %v232_v3  ;;  %235 = vst [vmem:[%s205_s7 + $0x10] sm:$0xf] %v234_v4  ;;  %v238_v6 = vld [vmem:[%s2024_s10 + $0x30] sm:$0xf] }
  0x2e   : > { %237 = vst [vmem:[%s205_s7 + $0x14] sm:$0xf] %v236_v5  ;;  %v240_v7 = vld [vmem:[%s2024_s10 + $0x38] sm:$0xf]  ;;  %v242_v8 = vld [vmem:[%s2024_s10 + $0x40] sm:$0xf] }
  0x2f   : > { %239 = vst [vmem:[%s205_s7 + $0x18] sm:$0xf] %v238_v6  ;;  %241 = vst [vmem:[%s205_s7 + $0x1c] sm:$0xf] %v240_v7  ;;  %v244_v9 = vld [vmem:[%s2024_s10 + $0x48] sm:$0xf] }
  0x30   : > { %243 = vst [vmem:[%s205_s7 + $0x20] sm:$0xf] %v242_v8  ;;  %v246_v10 = vld [vmem:[%s2024_s10 + $0x50] sm:$0xf]  ;;  %v248_v11 = vld [vmem:[%s2024_s10 + $0x58] sm:$0xf] }
  0x31   : > { %245 = vst [vmem:[%s205_s7 + $0x24] sm:$0xf] %v244_v9  ;;  %247 = vst [vmem:[%s205_s7 + $0x28] sm:$0xf] %v246_v10  ;;  %v250_v12 = vld [vmem:[%s2024_s10 + $0x60] sm:$0xf] }
  0x32   : > { %249 = vst [vmem:[%s205_s7 + $0x2c] sm:$0xf] %v248_v11  ;;  %v252_v13 = vld [vmem:[%s2024_s10 + $0x68] sm:$0xf]  ;;  %v254_v14 = vld [vmem:[%s2024_s10 + $0x70] sm:$0xf] }
  0x33   : > { %251 = vst [vmem:[%s205_s7 + $0x30] sm:$0xf] %v250_v12  ;;  %253 = vst [vmem:[%s205_s7 + $0x34] sm:$0xf] %v252_v13  ;;  %v256_v15 = vld [vmem:[%s2024_s10 + $0x78] sm:$0xf] }
  0x34   : > { %255 = vst [vmem:[%s205_s7 + $0x38] sm:$0xf] %v254_v14  ;;  %257 = vst [vmem:[%s205_s7 + $0x3c] sm:$0xf] %v256_v15 }
  0x35 PF: > { %p1452_p0 = scmp.ge.s32.totalorder %s1888_s27, 1  ;;  %p329_p1 = scmp.lt.s32.totalorder %s1888_s27, 5 }
  0x37   : > { %p330_p2 = pnand %p1452_p0, %p329_p1 }
  0x38   : > { %s336_s6 = sand.u32 (!%p330_p2), 1, %s1864_s21   ;;  %s2361_s9 = sand.u32 (!%p330_p2), 1, %s1856_s19  }
  0x39   : > { %333 = sbr.rel (%p330_p2) target bundleno = 759 (0x2f7), region = 77  ;;  %s1453_s17 = sshll.u32 (!%p330_p2), %s336_s6, 6 }
  0x3a   : > { %s1454_s28 = sshll.u32 (!%p330_p2), %s2361_s9, 7  ;;  %s1455_s29 = sshll.u32 (!%p330_p2), %s1872_s23, 4 }
  0x3b   : > { %s1457_s8 = sshll.u32 (!%p330_p2), %s1876_s24, 4  ;;  %p375_p3 = scmp.lt.s32.totalorder (!%p330_p2), %s1455_s29, 31 }
  0x3c   : > { %p381_p4 = scmp.lt.s32.totalorder (!%p330_p2), %s1457_s8, 31  ;;  %s2060_s6 = scalar_lea.vmem (!%p330_p2), [#allocation4], %s1453_s17 }
  0x3d   : > { %s2062_s9 = scalar_lea.vmem (!%p330_p2), [#allocation5], %s1454_s28  ;;  %p1459_p5 = scmp.ne.s32.totalorder (!%p330_p2), %s1872_s23, 0 }
  0x40   : > { %s2388_s29 = smov (!%p375_p3, %s1455_s29), 31  ;;  %s2390_s8 = smov (!%p381_p4, %s1457_s8), 31 }
  0x41   : > { %s1456_s12 = sshll.u32 %s2388_s29, 2  ;;  %s1458_s0 = sshll.u32 %s2390_s8, 3  ;;  %vm392_vm0 = vcmask (!%p1459_p5), 261120   ;;  %vm409_vm1 = vcmask (!%p1459_p5), 7168   ;;  %v1890_v16 = vmov (!%p1459_p5), 0.0  }
  0x42   : > { %s2053_s7 = scalar_lea.vmem %s2353_s1, %s1456_s12  ;;  %s2058_s21 = scalar_lea.vmem %s2354_s2, %s1458_s0  ;;  %393 = vst.msk [vmem:[#allocation2] sm:$0xff] (!%p1459_p5), %vm392_vm0, %v1890_v16  ;;  %394 = vst.msk [vmem:[#allocation2 + $0x8] sm:$0xff] (!%p1459_p5), %vm392_vm0, %v1890_v16 }
  0x43   : > { %391 = sbr.rel (%p1459_p5) target bundleno = 82 (0x52), region = 85  ;;  %395 = vst.msk [vmem:[#allocation2 + $0x10] sm:$0xff] (!%p1459_p5), %vm392_vm0, %v1890_v16  ;;  %396 = vst.msk [vmem:[#allocation2 + $0x18] sm:$0xff] (!%p1459_p5), %vm392_vm0, %v1890_v16 }
  0x44   : > { %397 = vst.msk [vmem:[#allocation2 + $0x20] sm:$0xff] (!%p1459_p5), %vm392_vm0, %v1890_v16  ;;  %398 = vst.msk [vmem:[#allocation2 + $0x28] sm:$0xff] (!%p1459_p5), %vm392_vm0, %v1890_v16 }
  0x45   : > { %399 = vst.msk [vmem:[#allocation2 + $0x30] sm:$0xff] (!%p1459_p5), %vm392_vm0, %v1890_v16  ;;  %400 = vst.msk [vmem:[#allocation2 + $0x38] sm:$0xff] (!%p1459_p5), %vm392_vm0, %v1890_v16 }
  0x46   : > { %401 = vst.msk [vmem:[#allocation2 + $0x40] sm:$0xff] (!%p1459_p5), %vm392_vm0, %v1890_v16  ;;  %402 = vst.msk [vmem:[#allocation2 + $0x48] sm:$0xff] (!%p1459_p5), %vm392_vm0, %v1890_v16 }
  0x47   : > { %403 = vst.msk [vmem:[#allocation2 + $0x50] sm:$0xff] (!%p1459_p5), %vm392_vm0, %v1890_v16  ;;  %404 = vst.msk [vmem:[#allocation2 + $0x58] sm:$0xff] (!%p1459_p5), %vm392_vm0, %v1890_v16 }
  0x48   : > { %405 = vst.msk [vmem:[#allocation2 + $0x60] sm:$0xff] (!%p1459_p5), %vm392_vm0, %v1890_v16  ;;  %406 = vst.msk [vmem:[#allocation2 + $0x68] sm:$0xff] (!%p1459_p5), %vm392_vm0, %v1890_v16 }
  0x49   : > { %407 = vst.msk [vmem:[#allocation2 + $0x70] sm:$0xff] (!%p1459_p5), %vm392_vm0, %v1890_v16  ;;  %408 = vst.msk [vmem:[#allocation2 + $0x78] sm:$0xff] (!%p1459_p5), %vm392_vm0, %v1890_v16 }
  0x4a   : > { %410 = vst.msk [vmem:[#allocation3] sm:$0xff] %vm409_vm1, %v1890_v16  ;;  %411 = vst.msk [vmem:[#allocation3 + $0x8] sm:$0xff] %vm409_vm1, %v1890_v16 }
  0x4b   : > { %412 = vst.msk [vmem:[#allocation3 + $0x10] sm:$0xff] %vm409_vm1, %v1890_v16  ;;  %413 = vst.msk [vmem:[#allocation3 + $0x18] sm:$0xff] %vm409_vm1, %v1890_v16 }
  0x4c   : > { %414 = vst.msk [vmem:[#allocation3 + $0x20] sm:$0xff] %vm409_vm1, %v1890_v16  ;;  %415 = vst.msk [vmem:[#allocation3 + $0x28] sm:$0xff] %vm409_vm1, %v1890_v16 }
  0x4d   : > { %416 = vst.msk [vmem:[#allocation3 + $0x30] sm:$0xff] %vm409_vm1, %v1890_v16  ;;  %417 = vst.msk [vmem:[#allocation3 + $0x38] sm:$0xff] %vm409_vm1, %v1890_v16 }
  0x4e   : > { %418 = vst.msk [vmem:[#allocation3 + $0x40] sm:$0xff] %vm409_vm1, %v1890_v16  ;;  %419 = vst.msk [vmem:[#allocation3 + $0x48] sm:$0xff] %vm409_vm1, %v1890_v16 }
  0x4f   : > { %420 = vst.msk [vmem:[#allocation3 + $0x50] sm:$0xff] %vm409_vm1, %v1890_v16  ;;  %421 = vst.msk [vmem:[#allocation3 + $0x58] sm:$0xff] %vm409_vm1, %v1890_v16 }
  0x50   : > { %422 = vst.msk [vmem:[#allocation3 + $0x60] sm:$0xff] %vm409_vm1, %v1890_v16  ;;  %423 = vst.msk [vmem:[#allocation3 + $0x68] sm:$0xff] %vm409_vm1, %v1890_v16 }
  0x51   : > { %424 = vst.msk [vmem:[#allocation3 + $0x70] sm:$0xff] %vm409_vm1, %v1890_v16  ;;  %425 = vst.msk [vmem:[#allocation3 + $0x78] sm:$0xff] %vm409_vm1, %v1890_v16 }
  0x52 PF: > { %v1720_v17 = vld [vmem:[%s2053_s7] sm:$0xff]   ;;  %v1721_v18 = vld [vmem:[%s2053_s7 + $0x8] sm:$0xff]   ;;  %v1722_v19 = vld [vmem:[%s2053_s7 + $0x10] sm:$0xff]   ;;  %vm780_vm2 = vcmask 7168   ;;  %vm683_vm3 = vcmask 261120   ;;  %p1476_p6 = scmp.ne.s32.totalorder %s1872_s23, 1 }
  0x53   : > { %1537 = vmatprep.subr.bf16.mxu0 %v1720_v17  ;;  %1609 = vmatprep.subr.bf16.mxu1 %v1720_v17  ;;  %v1723_v20 = vld [vmem:[%s2053_s7 + $0x18] sm:$0xff]   ;;  %v426_v21 = vld [vmem:[%s2060_s6] sm:$0xff]   ;;  %v428_v23 = vld [vmem:[%s2060_s6 + $0x8] sm:$0xff]  }
  0x54   : > { %1538 = vmatpush3.bf16.msra.mxu0 %v1720_v17  ;;  %1617 = vmatpush3.bf16.msra.mxu1 %v1720_v17  ;;  %v434_v22 = vld [vmem:[%s2060_s6 + $0x20] sm:$0xff]   ;;  %v718_v24 = vunpack.c.l.bf16 %v428_v23  ;;  %v716_v25 = vunpack.c.l.bf16 %v426_v21  ;;  %v719_v27 = vunpack.c.h.bf16 %v428_v23  ;;  %v717_v28 = vunpack.c.h.bf16 %v426_v21  ;;  %v1725_v29 = vld [vmem:[%s2053_s7 + $0x28] sm:$0xff]   ;;  %v430_v30 = vld [vmem:[%s2060_s6 + $0x10] sm:$0xff]  }
  0x55   : > { %1539 = vmatprep.subr.bf16.mxu0 %v1721_v18  ;;  %1610 = vmatprep.subr.bf16.mxu1 %v1721_v18  ;;  %v1724_v26 = vld [vmem:[%s2053_s7 + $0x20] sm:$0xff]   ;;  %v721_v31 = vunpack.c.h.bf16 %v430_v30  ;;  %v720_v32 = vunpack.c.l.bf16 %v430_v30  ;;  %v1726_v33 = vld [vmem:[%s2053_s7 + $0x30] sm:$0xff]   ;;  %v432_v34 = vld [vmem:[%s2060_s6 + $0x18] sm:$0xff]   ;;  %v725_v38 = vunpack.c.h.bf16 %v434_v22  ;;  %v724_v39 = vunpack.c.l.bf16 %v434_v22 }
  0x56   : > { %1553 = vmatprep.mubr.bf16.mxu0 %v426_v21  ;;  %1561 = vmatprep.mubr.bf16.mxu1 %v434_v22  ;;  %v723_v35 = vunpack.c.h.bf16 %v432_v34  ;;  %v722_v36 = vunpack.c.l.bf16 %v432_v34  ;;  %v1727_v37 = vld [vmem:[%s2053_s7 + $0x38] sm:$0xff]   ;;  %v436_v40 = vld [vmem:[%s2060_s6 + $0x28] sm:$0xff]   ;;  %v438_v41 = vld [vmem:[%s2060_s6 + $0x30] sm:$0xff]  }
  0x57   : > { %736 = vadd.xlane.f32.xlu1 %v718_v24  ;;  %732 = vadd.xlane.f32.xlu0 %v716_v25  ;;  %v727_v42 = vunpack.c.h.bf16 %v436_v40  ;;  %v726_v43 = vunpack.c.l.bf16 %v436_v40  ;;  %v440_v44 = vld [vmem:[%s2060_s6 + $0x38] sm:$0xff]   ;;  %v729_v45 = vunpack.c.h.bf16 %v438_v41  ;;  %v728_v46 = vunpack.c.l.bf16 %v438_v41  ;;  %v702_v49 = vld [vmem:[#allocation3 + $0x10] sm:$0xff]  ;;  %v705_v61 = vld [vmem:[#allocation3 + $0x28] sm:$0xff] }
  0x58   : > { %1540 = vmatpush3.bf16.msra.mxu0 %v1721_v18  ;;  %1618 = vmatpush3.bf16.msra.mxu1 %v1721_v18  ;;  %v731_v47 = vunpack.c.h.bf16 %v440_v44  ;;  %v730_v48 = vunpack.c.l.bf16 %v440_v44  ;;  %v703_v55 = vld [vmem:[#allocation3 + $0x18] sm:$0xff]  ;;  %v704_v62 = vld [vmem:[#allocation3 + $0x20] sm:$0xff]  ;;  %v706_v4 = vld [vmem:[#allocation3 + $0x30] sm:$0xff] }
  0x59   : > { %1541 = vmatprep.subr.bf16.mxu0 %v1722_v19  ;;  %1611 = vmatprep.subr.bf16.mxu1 %v1722_v19  ;;  %v700_v50 = vld [vmem:[#allocation3] sm:$0xff]  ;;  %v701_v56 = vld [vmem:[#allocation3 + $0x8] sm:$0xff]  ;;  %v707_v3 = vld [vmem:[#allocation3 + $0x38] sm:$0xff] }
  0x5a   : > { %v709_v9 = vld [vmem:[#allocation3 + $0x48] sm:$0xff]  ;;  %v708_v10 = vld [vmem:[#allocation3 + $0x40] sm:$0xff]  ;;  %v711_v15 = vld [vmem:[#allocation3 + $0x58] sm:$0xff] }
  0x5b   : > { %738 = vadd.xlane.f32.xlu1 %v719_v27  ;;  %734 = vadd.xlane.f32.xlu0 %v717_v28  ;;  %v710_v16 = vld [vmem:[#allocation3 + $0x50] sm:$0xff]  ;;  %v713_v21 = vld [vmem:[#allocation3 + $0x68] sm:$0xff]  ;;  %v712_v22 = vld [vmem:[#allocation3 + $0x60] sm:$0xff] }
  0x5c   : > { %1542 = vmatpush3.bf16.msra.mxu0 %v1722_v19  ;;  %1619 = vmatpush3.bf16.msra.mxu1 %v1722_v19  ;;  %v715_v27 = vld [vmem:[#allocation3 + $0x78] sm:$0xff]  ;;  %v714_v28 = vld [vmem:[#allocation3 + $0x70] sm:$0xff] }
  0x5d   : > { %1543 = vmatprep.subr.bf16.mxu0 %v1723_v20  ;;  %1612 = vmatprep.subr.bf16.mxu1 %v1723_v20 }
  0x5f   : > { %742 = vadd.xlane.f32.xlu1 %v721_v31  ;;  %740 = vadd.xlane.f32.xlu0 %v720_v32 }
  0x60   : > { %1544 = vmatpush3.bf16.msra.mxu0 %v1723_v20  ;;  %1620 = vmatpush3.bf16.msra.mxu1 %v1723_v20 }
  0x61   : > { %1545 = vmatprep.subr.bf16.mxu0 %v1724_v26  ;;  %1613 = vmatprep.subr.bf16.mxu1 %v1724_v26 }
  0x63   : > { %746 = vadd.xlane.f32.xlu1 %v723_v35  ;;  %744 = vadd.xlane.f32.xlu0 %v722_v36  ;;  %v442_v35 = vld [vmem:[#allocation2] sm:$0xff] }
  0x64   : > { %1546 = vmatpush3.bf16.msra.mxu0 %v1724_v26  ;;  %1621 = vmatpush3.bf16.msra.mxu1 %v1724_v26  ;;  %v450_v36 = vld [vmem:[#allocation2 + $0x40] sm:$0xff] }
  0x65   : > { %1547 = vmatprep.subr.bf16.mxu0 %v1725_v29  ;;  %1614 = vmatprep.subr.bf16.mxu1 %v1725_v29 }
  0x67   : > { %750 = vadd.xlane.f32.xlu1 %v725_v38  ;;  %748 = vadd.xlane.f32.xlu0 %v724_v39  ;;  %v445_v39 = vld [vmem:[#allocation2 + $0x18] sm:$0xff] }
  0x68   : > { %1548 = vmatpush3.bf16.msra.mxu0 %v1725_v29  ;;  %1622 = vmatpush3.bf16.msra.mxu1 %v1725_v29 }
  0x69   : > { %1549 = vmatprep.subr.bf16.mxu0 %v1726_v33  ;;  %1615 = vmatprep.subr.bf16.mxu1 %v1726_v33 }
  0x6b   : > { %754 = vadd.xlane.f32.xlu1 %v727_v42  ;;  %752 = vadd.xlane.f32.xlu0 %v726_v43 }
  0x6c   : > { %1550 = vmatpush3.bf16.msra.mxu0 %v1726_v33  ;;  %1623 = vmatpush3.bf16.msra.mxu1 %v1726_v33  ;;  %v444_v33 = vld [vmem:[#allocation2 + $0x10] sm:$0xff] }
  0x6d   : > { %1551 = vmatprep.subr.bf16.mxu0 %v1727_v37  ;;  %1616 = vmatprep.subr.bf16.mxu1 %v1727_v37 }
  0x6f   : > { %758 = vadd.xlane.f32.xlu1 %v729_v45  ;;  %756 = vadd.xlane.f32.xlu0 %v728_v46  ;;  %v451_v45 = vld [vmem:[#allocation2 + $0x48] sm:$0xff] }
  0x70   : > { %1552 = vmatpush3.bf16.msra.mxu0 %v1727_v37  ;;  %1624 = vmatpush3.bf16.msra.mxu1 %v1727_v37  ;;  %v443_v46 = vld [vmem:[#allocation2 + $0x8] sm:$0xff] }
  0x73   : > { %1554 = vmatmul.mubr.bf16.vlgmr.msra.gmra.mrb[0].mxu0 %v428_v23  ;;  %1562 = vmatmul.mubr.bf16.vlgmr.msra.gmra.mrb[0].mxu1 %v436_v40  ;;  %v453_v40 = vld [vmem:[#allocation2 + $0x58] sm:$0xff] }
  0x74   : > { %1557 = vmatprep.mubr.bf16.mxu0 %v430_v30  ;;  %1565 = vmatprep.mubr.bf16.mxu1 %v438_v41 }
  0x75   : > { %762 = vadd.xlane.f32.xlu1 %v731_v47  ;;  %760 = vadd.xlane.f32.xlu0 %v730_v48 }
  0x7b   : > { %1558 = vmatmul.mubr.bf16.gmra.mrb[4].mxu0 %v432_v34  ;;  %1566 = vmatmul.mubr.bf16.gmra.mrb[4].mxu1 %v440_v44  ;;  %v452_v34 = vld [vmem:[#allocation2 + $0x50] sm:$0xff] }
  0xe4   : > { %v737_v51 = vpop.xlane.xlu1 %736  ;;  %v733_v52 = vpop.xlane.xlu0 %732 }
  0xe5   : > { %v766_v53 = vadd.f32 %v737_v51, %v702_v49  ;;  %v764_v54 = vadd.f32 %v733_v52, %v700_v50 }
  0xe7   : > { %783 = vst.msk [vmem:[#allocation3 + $0x10] sm:$0xff] %vm780_vm2, %v766_v53  ;;  %781 = vst.msk [vmem:[#allocation3] sm:$0xff] %vm780_vm2, %v764_v54 }
  0xe8   : > { %v739_v57 = vpop.xlane.xlu1 %738  ;;  %v735_v58 = vpop.xlane.xlu0 %734 }
  0xe9   : > { %v767_v59 = vadd.f32 %v739_v57, %v703_v55  ;;  %v765_v60 = vadd.f32 %v735_v58, %v701_v56  ;;  %v448_v57 = vld [vmem:[#allocation2 + $0x30] sm:$0xff] }
  0xea   : > { %v456_v58 = vld [vmem:[#allocation2 + $0x70] sm:$0xff] }
  0xeb   : > { %784 = vst.msk [vmem:[#allocation3 + $0x18] sm:$0xff] %vm780_vm2, %v767_v59  ;;  %782 = vst.msk [vmem:[#allocation3 + $0x8] sm:$0xff] %vm780_vm2, %v765_v60  ;;  %v446_v59 = vld [vmem:[#allocation2 + $0x20] sm:$0xff] }
  0xec   : > { %v743_v63 = vpop.xlane.xlu1 %742  ;;  %v741_v0 = vpop.xlane.xlu0 %740  ;;  %v454_v60 = vld [vmem:[#allocation2 + $0x60] sm:$0xff] }
  0xed   : > { %v769_v1 = vadd.f32 %v743_v63, %v705_v61  ;;  %v768_v2 = vadd.f32 %v741_v0, %v704_v62  ;;  %v449_v63 = vld [vmem:[#allocation2 + $0x38] sm:$0xff] }
  0xee   : > { %v457_v0 = vld [vmem:[#allocation2 + $0x78] sm:$0xff] }
  0xef   : > { %786 = vst.msk [vmem:[#allocation3 + $0x28] sm:$0xff] %vm780_vm2, %v769_v1  ;;  %785 = vst.msk [vmem:[#allocation3 + $0x20] sm:$0xff] %vm780_vm2, %v768_v2 }
  0xf0   : > { %v747_v5 = vpop.xlane.xlu1 %746  ;;  %v745_v6 = vpop.xlane.xlu0 %744 }
  0xf1   : > { %v771_v7 = vadd.f32 %v747_v5, %v707_v3  ;;  %v770_v8 = vadd.f32 %v745_v6, %v706_v4  ;;  %v455_v5 = vld [vmem:[#allocation2 + $0x68] sm:$0xff] }
  0xf2   : > { %v447_v6 = vld [vmem:[#allocation2 + $0x28] sm:$0xff] }
  0xf3   : > { %788 = vst.msk [vmem:[#allocation3 + $0x38] sm:$0xff] %vm780_vm2, %v771_v7  ;;  %787 = vst.msk [vmem:[#allocation3 + $0x30] sm:$0xff] %vm780_vm2, %v770_v8 }
  0xf4   : > { %v751_v11 = vpop.xlane.xlu1 %750  ;;  %v749_v12 = vpop.xlane.xlu0 %748 }
  0xf5   : > { %v773_v13 = vadd.f32 %v751_v11, %v709_v9  ;;  %v772_v14 = vadd.f32 %v749_v12, %v708_v10 }
  0xf7   : > { %790 = vst.msk [vmem:[#allocation3 + $0x48] sm:$0xff] %vm780_vm2, %v773_v13  ;;  %789 = vst.msk [vmem:[#allocation3 + $0x40] sm:$0xff] %vm780_vm2, %v772_v14 }
  0xf8   : > { %v755_v17 = vpop.xlane.xlu1 %754  ;;  %v753_v18 = vpop.xlane.xlu0 %752 }
  0xf9   : > { %v775_v19 = vadd.f32 %v755_v17, %v711_v15  ;;  %v774_v20 = vadd.f32 %v753_v18, %v710_v16  ;;  %v801_v18 = vld [vmem:[#allocation3] sm:$0xff] (!%p1476_p6) }
  0xfa   : > { %vm817_vm5 = vcmp.gt.f32.partialorder (!%p1476_p6), %v801_v18, 0.0 }
  0xfb   : > { %792 = vst.msk [vmem:[#allocation3 + $0x58] sm:$0xff] %vm780_vm2, %v775_v19  ;;  %791 = vst.msk [vmem:[#allocation3 + $0x50] sm:$0xff] %vm780_vm2, %v774_v20  ;;  %v1891_v20 = vmov (!%p1476_p6), 0  }
  0xfc   : > { %v759_v23 = vpop.xlane.xlu1 %758  ;;  %v757_v24 = vpop.xlane.xlu0 %756  ;;  %1745 = vset.pattern.permute.xlu1 (!%p1476_p6), %v1891_v20  ;;  %1744 = vset.pattern.permute.xlu0 (!%p1476_p6), %v1891_v20 }
  0xfd   : > { %v777_v25 = vadd.f32 %v759_v23, %v713_v21  ;;  %v776_v26 = vadd.f32 %v757_v24, %v712_v22  ;;  %v802_v21 = vld [vmem:[#allocation3 + $0x8] sm:$0xff] (!%p1476_p6)  ;;  %v993_v24 = vsel (!%p1476_p6), %vm817_vm5, 1, %v1891_v20 }
  0xfe   : > { %v809_v17 = vld [vmem:[#allocation3 + $0x40] sm:$0xff] (!%p1476_p6)  ;;  %v810_v19 = vld [vmem:[#allocation3 + $0x48] sm:$0xff] (!%p1476_p6)  ;;  %1010 = vperm.xlu0 (!%p1476_p6), %1744, %v993_v24   ;;  %vm818_vm7 = vcmp.gt.f32.partialorder (!%p1476_p6), %v802_v21, 0.0 }
  0xff   : > { %794 = vst.msk [vmem:[#allocation3 + $0x68] sm:$0xff] %vm780_vm2, %v777_v25  ;;  %793 = vst.msk [vmem:[#allocation3 + $0x60] sm:$0xff] %vm780_vm2, %v776_v26  ;;  %vm825_vm4 = vcmp.gt.f32.partialorder (!%p1476_p6), %v809_v17, 0.0  ;;  %vm826_vm6 = vcmp.gt.f32.partialorder (!%p1476_p6), %v810_v19, 0.0  ;;  %v833_v25 = vsel (!%p1476_p6), %vm817_vm5, %v801_v18, 1.0  ;;  %v2150_v26 = vld [vmem:[#allocation3 + $0x10] sm:$0xff] (!%p1476_p6) }
 0x100   : > { %v1001_v22 = vsel (!%p1476_p6), %vm825_vm4, 1, %v1891_v20  ;;  %v841_v23 = vsel (!%p1476_p6), %vm825_vm4, %v809_v17, 1.0  ;;  %1746 = vrcp.f32 (!%p1476_p6), %v833_v25  ;;  %vm819_vm8 = vcmp.gt.f32.partialorder (!%p1476_p6), %v2150_v26, 0.0 }
 0x101   : > { %1034 = vperm.xlu1 (!%p1476_p6), %1745, %v1001_v22   ;;  %1748 = vrcp.f32 (!%p1476_p6), %v841_v23 }
 0x102   : > { %v763_v29 = vpop.xlane.xlu1 %762  ;;  %v761_v30 = vpop.xlane.xlu0 %760 }
 0x103   : > { %v779_v31 = vadd.f32 %v763_v29, %v715_v27  ;;  %v778_v32 = vadd.f32 %v761_v30, %v714_v28  ;;  %v2152_v27 = vld [vmem:[#allocation3 + $0x50] sm:$0xff] (!%p1476_p6)  ;;  %v1002_v28 = vsel (!%p1476_p6), %vm826_vm6, 1, %v1891_v20  ;;  %v834_v29 = vsel (!%p1476_p6), %vm818_vm7, %v802_v21, 1.0 }
 0x104   : > { %v994_v30 = vsel (!%p1476_p6), %vm818_vm7, 1, %v1891_v20  ;;  %1750 = vrcp.f32 (!%p1476_p6), %v834_v29  ;;  %vm827_vm9 = vcmp.gt.f32.partialorder (!%p1476_p6), %v2152_v27, 0.0 }
 0x105   : > { %796 = vst.msk [vmem:[#allocation3 + $0x78] sm:$0xff] %vm780_vm2, %v779_v31  ;;  %795 = vst.msk [vmem:[#allocation3 + $0x70] sm:$0xff] %vm780_vm2, %v778_v32  ;;  %v842_v31 = vsel (!%p1476_p6), %vm826_vm6, %v810_v19, 1.0  ;;  %v2159_v32 = vld [vmem:[#allocation3 + $0x18] sm:$0xff] (!%p1476_p6)  ;;  %1037 = vperm.xlu1 (!%p1476_p6), %1745, %v1002_v28   ;;  %1013 = vperm.xlu0 (!%p1476_p6), %1744, %v994_v30  }
 0x106   : > { %1752 = vrcp.f32 (!%p1476_p6), %v842_v31  ;;  %vm820_vm10 = vcmp.gt.f32.partialorder (!%p1476_p6), %v2159_v32, 0.0 }
 0x146   : > { %v1555_v37 = vpop.f32.mrb[0].mxu0  ;;  %v1563_v38 = vpop.f32.mrb[0].mxu1 }
 0x147   : > { %v669_v41 = vadd.f32 %v1555_v37, %v444_v33  ;;  %v677_v42 = vadd.f32 %v1563_v38, %v452_v34  ;;  %v604_v43 = vpop.f32.mrb[1].mxu0  ;;  %v636_v44 = vpop.f32.mrb[1].mxu1  ;;  %v835_v33 = vsel (!%p1476_p6), %vm819_vm8, %v2150_v26, 1.0  ;;  %v2165_v34 = vld [vmem:[#allocation3 + $0x58] sm:$0xff] (!%p1476_p6)  ;;  %v1089_v38 = vld [vmem:[%s2355_s3] sm:$0xff] (!%p1476_p6) }
 0x148   : > { %v667_v47 = vadd.f32 %v604_v43, %v442_v35  ;;  %v675_v48 = vadd.f32 %v636_v44, %v450_v36  ;;  %v1556_v49 = vpop.f32.mrb[2].mxu0  ;;  %v1564_v50 = vpop.f32.mrb[2].mxu1  ;;  %v843_v35 = vsel (!%p1476_p6), %vm827_vm9, %v2152_v27, 1.0  ;;  %1754 = vrcp.f32 (!%p1476_p6), %v835_v33 }
 0x149   : > { %686 = vst.msk [vmem:[#allocation2 + $0x10] sm:$0xff] %vm683_vm3, %v669_v41  ;;  %694 = vst.msk [vmem:[#allocation2 + $0x50] sm:$0xff] %vm683_vm3, %v677_v42  ;;  %v670_v51 = vadd.f32 %v1556_v49, %v445_v39  ;;  %v678_v52 = vadd.f32 %v1564_v50, %v453_v40  ;;  %v639_v53 = vpop.f32.mrb[3].mxu1  ;;  %v607_v54 = vpop.f32.mrb[3].mxu0  ;;  %vm828_vm11 = vcmp.gt.f32.partialorder (!%p1476_p6), %v2165_v34, 0.0  ;;  %v836_v36 = vsel (!%p1476_p6), %vm820_vm10, %v2159_v32, 1.0 }
 0x14a   : > { %684 = vst.msk [vmem:[#allocation2] sm:$0xff] %vm683_vm3, %v667_v47  ;;  %692 = vst.msk [vmem:[#allocation2 + $0x40] sm:$0xff] %vm683_vm3, %v675_v48  ;;  %v676_v55 = vadd.f32 %v639_v53, %v451_v45  ;;  %v668_v56 = vadd.f32 %v607_v54, %v443_v46  ;;  %1756 = vrcp.f32 (!%p1476_p6), %v843_v35  ;;  %v844_v37 = vsel (!%p1476_p6), %vm828_vm11, %v2165_v34, 1.0  ;;  %v1090_v39 = vld [vmem:[%s2355_s3 + $0x8] sm:$0xff] (!%p1476_p6)  ;;  %v1747_v40 = vpop.eup (!%p1476_p6), %1746  ;;  %v1091_v41 = vld [vmem:[%s2355_s3 + $0x10] sm:$0xff] (!%p1476_p6) }
 0x14b   : > { %687 = vst.msk [vmem:[#allocation2 + $0x18] sm:$0xff] %vm683_vm3, %v670_v51  ;;  %695 = vst.msk [vmem:[#allocation2 + $0x58] sm:$0xff] %vm683_vm3, %v678_v52  ;;  %1758 = vrcp.f32 (!%p1476_p6), %v836_v36  ;;  %v1092_v42 = vld [vmem:[%s2355_s3 + $0x18] sm:$0xff] (!%p1476_p6)  ;;  %v1749_v43 = vpop.eup (!%p1476_p6), %1748  ;;  %883 = vperm.xlu0 (!%p1476_p6), %1744, %v1747_v40   ;;  %v1601_v45 = vpack.c.bf16 (!%p1476_p6), %v1090_v39, %v1089_v38  ;;  %v2190_v46 = vld [vmem:[#allocation3 + $0x20] sm:$0xff] (!%p1476_p6) }
 0x14c   : > { %693 = vst.msk [vmem:[#allocation2 + $0x48] sm:$0xff] %vm683_vm3, %v676_v55  ;;  %685 = vst.msk [vmem:[#allocation2 + $0x8] sm:$0xff] %vm683_vm3, %v668_v56  ;;  %v1751_v44 = vpop.eup (!%p1476_p6), %1750  ;;  %1760 = vrcp.f32 (!%p1476_p6), %v844_v37  ;;  %v1605_v47 = vpack.c.bf16 (!%p1476_p6), %v1092_v42, %v1091_v41  ;;  %v813_v49 = vld [vmem:[#allocation3 + $0x60] sm:$0xff] (!%p1476_p6)  ;;  %vm821_vm12 = vcmp.gt.f32.partialorder (!%p1476_p6), %v2190_v46, 0.0  ;;  %v806_v51 = vld [vmem:[#allocation3 + $0x28] sm:$0xff] (!%p1476_p6) }
 0x14d   : > { %888 = vperm.xlu1 (!%p1476_p6), %1745, %v1751_v44   ;;  %v1753_v48 = vpop.eup (!%p1476_p6), %1752  ;;  %1602 = vmatprep.subr.bf16.mxu0 (!%p1476_p6), %v1601_v45  ;;  %vm829_vm13 = vcmp.gt.f32.partialorder (!%p1476_p6), %v813_v49, 0.0  ;;  %v837_v53 = vsel (!%p1476_p6), %vm821_vm12, %v2190_v46, 1.0  ;;  %v814_v54 = vld [vmem:[#allocation3 + $0x68] sm:$0xff] (!%p1476_p6)  ;;  %vm822_vm14 = vcmp.gt.f32.partialorder (!%p1476_p6), %v806_v51, 0.0  ;;  %v977_v32 = vld [vmem:[%s2058_s21] sm:$0xff] (!%p1476_p6) }
 0x14e   : > { %v1559_v61 = vpop.f32.mrb[4].mxu0  ;;  %v1567_v62 = vpop.f32.mrb[4].mxu1  ;;  %800 = sbr.rel (%p1476_p6) target bundleno = 733 (0x2dd), region = 89  ;;  %1625 = vmatprep.subr.bf16.mxu1 (!%p1476_p6), %v1601_v45  ;;  %1604 = vmatpush3.bf16.msra.mxu0 (!%p1476_p6), %v1601_v45  ;;  %v845_v56 = vsel (!%p1476_p6), %vm829_vm13, %v813_v49, 1.0  ;;  %1762 = vrcp.f32 (!%p1476_p6), %v837_v53  ;;  %vm830_vm15 = vcmp.gt.f32.partialorder (!%p1476_p6), %v814_v54, 0.0  ;;  %v978_v36 = vld [vmem:[%s2058_s21 + $0x8] sm:$0xff] (!%p1476_p6) }
 0x14f   : > { %v673_v1 = vadd.f32 %v1559_v61, %v448_v57  ;;  %v681_v2 = vadd.f32 %v1567_v62, %v456_v58  ;;  %v620_v3 = vpop.f32.mrb[5].mxu0  ;;  %v652_v4 = vpop.f32.mrb[5].mxu1  ;;  %923 = vperm.xlu0 (!%p1476_p6), %1744, %v1749_v43   ;;  %1606 = vmatprep.subr.bf16.mxu0 (!%p1476_p6), %v1605_v47  ;;  %v838_v58 = vsel (!%p1476_p6), %vm822_vm14, %v806_v51, 1.0  ;;  %1764 = vrcp.f32 (!%p1476_p6), %v845_v56  ;;  %v985_v40 = vld [vmem:[%s2058_s21 + $0x40] sm:$0xff] (!%p1476_p6)  ;;  %v986_v44 = vld [vmem:[%s2058_s21 + $0x48] sm:$0xff] (!%p1476_p6) }
 0x150   : > { %v671_v7 = vadd.f32 %v620_v3, %v446_v59  ;;  %v679_v8 = vadd.f32 %v652_v4, %v454_v60  ;;  %v1560_v9 = vpop.f32.mrb[6].mxu0  ;;  %v1568_v10 = vpop.f32.mrb[6].mxu1  ;;  %1627 = vmatpush3.bf16.msra.mxu1 (!%p1476_p6), %v1601_v45  ;;  %v995_v59 = vsel (!%p1476_p6), %vm819_vm8, 1, %v1891_v20  ;;  %v846_v60 = vsel (!%p1476_p6), %vm830_vm15, %v814_v54, 1.0  ;;  %v808_v3 = vld [vmem:[#allocation3 + $0x38] sm:$0xff] (!%p1476_p6)  ;;  %v867_v51 = vld [vmem:[#allocation2 + $0x10] sm:$0xff] (!%p1476_p6) }
 0x151   : > { %690 = vst.msk [vmem:[#allocation2 + $0x30] sm:$0xff] %vm683_vm3, %v673_v1  ;;  %698 = vst.msk [vmem:[#allocation2 + $0x70] sm:$0xff] %vm683_vm3, %v681_v2  ;;  %v674_v11 = vadd.f32 %v1560_v9, %v449_v63  ;;  %v682_v12 = vadd.f32 %v1568_v10, %v457_v0  ;;  %v655_v13 = vpop.f32.mrb[7].mxu1  ;;  %v623_v14 = vpop.f32.mrb[7].mxu0  ;;  %928 = vperm.xlu1 (!%p1476_p6), %1745, %v1753_v48   ;;  %1626 = vmatprep.subr.bf16.mxu1 (!%p1476_p6), %v1605_v47  ;;  %v1003_v61 = vsel (!%p1476_p6), %vm827_vm9, 1, %v1891_v20  ;;  %v807_v63 = vld [vmem:[#allocation3 + $0x30] sm:$0xff] (!%p1476_p6) }
 0x152   : > { %688 = vst.msk [vmem:[#allocation2 + $0x20] sm:$0xff] %vm683_vm3, %v671_v7  ;;  %696 = vst.msk [vmem:[#allocation2 + $0x60] sm:$0xff] %vm683_vm3, %v679_v8  ;;  %v680_v15 = vadd.f32 %v655_v13, %v455_v5  ;;  %v672_v16 = vadd.f32 %v623_v14, %v447_v6  ;;  %v1755_v50 = vpop.eup (!%p1476_p6), %1754  ;;  %1608 = vmatpush3.bf16.msra.mxu0 (!%p1476_p6), %v1605_v47  ;;  %1766 = vrcp.f32 (!%p1476_p6), %v838_v58  ;;  %v996_v62 = vsel (!%p1476_p6), %vm820_vm10, 1, %v1891_v20  ;;  %v815_v1 = vld [vmem:[#allocation3 + $0x70] sm:$0xff] (!%p1476_p6)  ;;  %v816_v6 = vld [vmem:[#allocation3 + $0x78] sm:$0xff] (!%p1476_p6) }
 0x153   : > { %691 = vst.msk [vmem:[#allocation2 + $0x38] sm:$0xff] %vm683_vm3, %v674_v11  ;;  %699 = vst.msk [vmem:[#allocation2 + $0x78] sm:$0xff] %vm683_vm3, %v682_v12  ;;  %893 = vperm.xlu0 (!%p1476_p6), %1744, %v1755_v50   ;;  %1768 = vrcp.f32 (!%p1476_p6), %v846_v60  ;;  %v1004_v0 = vsel (!%p1476_p6), %vm828_vm11, 1, %v1891_v20  ;;  %vm823_vm0 = vcmp.gt.f32.partialorder (!%p1476_p6), %v807_v63, 0.0  ;;  %vm831_vm1 = vcmp.gt.f32.partialorder (!%p1476_p6), %v815_v1, 0.0  ;;  %v865_v29 = vld [vmem:[#allocation2] sm:$0xff] (!%p1476_p6) }
 0x154   : > { %697 = vst.msk [vmem:[#allocation2 + $0x68] sm:$0xff] %vm683_vm3, %v680_v15  ;;  %689 = vst.msk [vmem:[#allocation2 + $0x28] sm:$0xff] %vm683_vm3, %v672_v16  ;;  %v1757_v52 = vpop.eup (!%p1476_p6), %1756  ;;  %1628 = vmatpush3.bf16.msra.mxu1 (!%p1476_p6), %v1605_v47  ;;  %v839_v5 = vsel (!%p1476_p6), %vm823_vm0, %v807_v63, 1.0  ;;  %vm824_vm2 = vcmp.gt.f32.partialorder (!%p1476_p6), %v808_v3, 0.0  ;;  %v847_v8 = vsel (!%p1476_p6), %vm831_vm1, %v815_v1, 1.0  ;;  %vm832_vm4 = vcmp.gt.f32.partialorder (!%p1476_p6), %v816_v6, 0.0 }
 0x155   : > { %v1759_v55 = vpop.eup %1758  ;;  %933 = vperm.xlu1 %1745, %v1757_v52   ;;  %1770 = vrcp.f32 %v839_v5  ;;  %v840_v10 = vsel %vm824_vm2, %v808_v3, 1.0  ;;  %v997_v11 = vsel %vm821_vm12, 1, %v1891_v20  ;;  %v848_v12 = vsel %vm832_vm4, %v816_v6, 1.0  ;;  %v866_v30 = vld [vmem:[#allocation2 + $0x8] sm:$0xff]  ;;  %v873_v35 = vld [vmem:[#allocation2 + $0x40] sm:$0xff]  ;;  %v875_v53 = vld [vmem:[#allocation2 + $0x50] sm:$0xff] }
 0x156   : > { %v1761_v57 = vpop.eup %1760  ;;  %1772 = vrcp.f32 %v847_v8  ;;  %v1005_v13 = vsel %vm829_vm13, 1, %v1891_v20  ;;  %v998_v14 = vsel %vm822_vm14, 1, %v1891_v20  ;;  %v1006_v15 = vsel %vm830_vm15, 1, %v1891_v20  ;;  %v979_v54 = vld [vmem:[%s2058_s21 + $0x10] sm:$0xff]  ;;  %v980_v63 = vld [vmem:[%s2058_s21 + $0x18] sm:$0xff] }
 0x157   : > { %898 = vperm.xlu0 %1744, %v1759_v55   ;;  %1774 = vrcp.f32 %v840_v10  ;;  %v999_v21 = vsel %vm823_vm0, 1, %v1891_v20  ;;  %v1007_v22 = vsel %vm831_vm1, 1, %v1891_v20  ;;  %v1000_v23 = vsel %vm824_vm2, 1, %v1891_v20  ;;  %v987_v58 = vld [vmem:[%s2058_s21 + $0x50] sm:$0xff]  ;;  %v988_v3 = vld [vmem:[%s2058_s21 + $0x58] sm:$0xff] }
 0x158   : > { %v1763_v2 = vpop.eup %1762  ;;  %1776 = vrcp.f32 %v848_v12  ;;  %v1008_v24 = vsel %vm832_vm4, 1, %v1891_v20  ;;  %v874_v20 = vld [vmem:[#allocation2 + $0x48] sm:$0xff] }
 0x159   : > { %938 = vperm.xlu1 %1745, %v1761_v57   ;;  %v1765_v4 = vpop.eup %1764  ;;  %v868_v57 = vld [vmem:[#allocation2 + $0x18] sm:$0xff] }
 0x15b   : > { %1016 = vperm.xlu0 %1744, %v995_v59  }
 0x15c   : > { %v1767_v7 = vpop.eup %1766 }
 0x15d   : > { %1040 = vperm.xlu1 %1745, %v1003_v61   ;;  %v1769_v9 = vpop.eup %1768 }
 0x15f   : > { %1019 = vperm.xlu0 %1744, %v996_v62   ;;  %v1771_v16 = vpop.eup %1770  ;;  %v876_v62 = vld [vmem:[#allocation2 + $0x58] sm:$0xff] }
 0x160   : > { %v1773_v17 = vpop.eup %1772 }
 0x161   : > { %1043 = vperm.xlu1 %1745, %v1004_v0   ;;  %v1775_v18 = vpop.eup %1774 }
 0x162   : > { %v1777_v19 = vpop.eup %1776 }
 0x163   : > { %903 = vperm.xlu0 %1744, %v1763_v2  }
 0x165   : > { %943 = vperm.xlu1 %1745, %v1765_v4  }
 0x167   : > { %908 = vperm.xlu0 %1744, %v1767_v7  }
 0x169   : > { %948 = vperm.xlu1 %1745, %v1769_v9  }
 0x16b   : > { %1022 = vperm.xlu0 %1744, %v997_v11   ;;  %v869_v11 = vld [vmem:[#allocation2 + $0x20] sm:$0xff] }
 0x16d   : > { %1046 = vperm.xlu1 %1745, %v1005_v13   ;;  %v877_v13 = vld [vmem:[#allocation2 + $0x60] sm:$0xff] }
 0x16f   : > { %1025 = vperm.xlu0 %1744, %v998_v14   ;;  %v981_v14 = vld [vmem:[%s2058_s21 + $0x20] sm:$0xff] }
 0x171   : > { %1049 = vperm.xlu1 %1745, %v1006_v15  }
 0x173   : > { %913 = vperm.xlu0 %1744, %v1771_v16  }
 0x175   : > { %953 = vperm.xlu1 %1745, %v1773_v17   ;;  %v870_v17 = vld [vmem:[#allocation2 + $0x28] sm:$0xff] }
 0x177   : > { %918 = vperm.xlu0 %1744, %v1775_v18   ;;  %v989_v18 = vld [vmem:[%s2058_s21 + $0x60] sm:$0xff] }
 0x179   : > { %958 = vperm.xlu1 %1745, %v1777_v19  }
 0x17b   : > { %1028 = vperm.xlu0 %1744, %v999_v21  }
 0x17d   : > { %1052 = vperm.xlu1 %1745, %v1007_v22   ;;  %v1011_v25 = vpop.permute.xlu0 %1010 }
 0x17e   : > { %vm1057_vm5 = vcmp.eq.s32.totalorder %v1011_v25, 1 }
 0x17f   : > { %1031 = vperm.xlu0 %1744, %v1000_v23   ;;  %v878_v23 = vld [vmem:[#allocation2 + $0x68] sm:$0xff] }
 0x180   : > { %v1035_v26 = vpop.permute.xlu1 %1034 }
 0x181   : > { %1055 = vperm.xlu1 %1745, %v1008_v24   ;;  %vm1065_vm7 = vcmp.eq.s32.totalorder %v1035_v26, 1  ;;  %v982_v24 = vld [vmem:[%s2058_s21 + $0x28] sm:$0xff] }
 0x184   : > { %v1014_v27 = vpop.permute.xlu0 %1013  ;;  %v1038_v28 = vpop.permute.xlu1 %1037 }
 0x185   : > { %vm1058_vm6 = vcmp.eq.s32.totalorder %v1014_v27, 1  ;;  %vm1066_vm8 = vcmp.eq.s32.totalorder %v1038_v28, 1  ;;  %v990_v28 = vld [vmem:[%s2058_s21 + $0x68] sm:$0xff] }
 0x1ca   : > { %v884_v31 = vpop.permute.xlu0 %883 }
 0x1cb   : > { %v961_v33 = vmul.f32 %v884_v31, %v865_v29 }
 0x1cc   : > { %v889_v34 = vpop.permute.xlu1 %888 }
 0x1cd   : > { %v962_v37 = vmul.f32 %v889_v34, %v866_v30  ;;  %v1073_v38 = vsel %vm1057_vm5, %v961_v33, %v977_v32 }
 0x1ce   : > { %1577 = vmatprep.mubr.msk.f32.mxu0 %vm683_vm3, %v1073_v38  ;;  %v924_v39 = vpop.permute.xlu0 %923  ;;  %v879_v38 = vld [vmem:[#allocation2 + $0x70] sm:$0xff] }
 0x1cf   : > { %v969_v41 = vmul.f32 %v924_v39, %v873_v35  ;;  %v1074_v42 = vsel %vm1058_vm6, %v962_v37, %v978_v36  ;;  %v871_v36 = vld [vmem:[#allocation2 + $0x30] sm:$0xff] }
 0x1d0   : > { %v929_v43 = vpop.permute.xlu1 %928  ;;  %1578 = vmatmul.mubr.msk.f32.vlgmr.msra.gmra.mrb[0].mxu0 %vm683_vm3, %v1074_v42  ;;  %v991_v42 = vld [vmem:[%s2058_s21 + $0x70] sm:$0xff] }
 0x1d1   : > { %v970_v45 = vmul.f32 %v929_v43, %v874_v20  ;;  %v1081_v46 = vsel %vm1065_vm7, %v969_v41, %v985_v40  ;;  %v983_v20 = vld [vmem:[%s2058_s21 + $0x30] sm:$0xff]  ;;  %v872_v41 = vld [vmem:[#allocation2 + $0x38] sm:$0xff] }
 0x1d2   : > { %1589 = vmatprep.mubr.msk.f32.mxu1 %vm683_vm3, %v1081_v46  ;;  %v894_v47 = vpop.permute.xlu0 %893  ;;  %v880_v46 = vld [vmem:[#allocation2 + $0x78] sm:$0xff] }
 0x1d3   : > { %v1082_v48 = vsel %vm1066_vm8, %v970_v45, %v986_v44  ;;  %v963_v55 = vmul.f32 %v894_v47, %v867_v51  ;;  %v984_v47 = vld [vmem:[%s2058_s21 + $0x38] sm:$0xff] }
 0x1d4   : > { %v934_v49 = vpop.permute.xlu1 %933  ;;  %1590 = vmatmul.mubr.msk.f32.vlgmr.msra.gmra.mrb[0].mxu1 %vm683_vm3, %v1082_v48  ;;  %v992_v51 = vld [vmem:[%s2058_s21 + $0x78] sm:$0xff] }
 0x1d5   : > { %v971_v59 = vmul.f32 %v934_v49, %v875_v53 }
 0x1d6   : > { %v899_v50 = vpop.permute.xlu0 %898 }
 0x1d7   : > { %v964_v0 = vmul.f32 %v899_v50, %v868_v57 }
 0x1d8   : > { %v939_v52 = vpop.permute.xlu1 %938 }
 0x1d9   : > { %v972_v4 = vmul.f32 %v939_v52, %v876_v62 }
 0x1da   : > { %v1017_v56 = vpop.permute.xlu0 %1016 }
 0x1db   : > { %vm1059_vm9 = vcmp.eq.s32.totalorder %v1017_v56, 1  ;;  %v1477_v56 = vld [vmem:[%s2356_s4] ss:$0 sm:$0xff] }
 0x1dc   : > { %v1041_v60 = vpop.permute.xlu1 %1040  ;;  %v1075_v61 = vsel %vm1059_vm9, %v963_v55, %v979_v54 }
 0x1dd   : > { %vm1067_vm10 = vcmp.eq.s32.totalorder %v1041_v60, 1  ;;  %1580 = vmatprep.mubr.msk.f32.mxu0 %vm683_vm3, %v1075_v61 }
 0x1de   : > { %v1083_v1 = vsel %vm1067_vm10, %v971_v59, %v987_v58  ;;  %v1020_v2 = vpop.permute.xlu0 %1019 }
 0x1df   : > { %1592 = vmatprep.mubr.msk.f32.mxu1 %vm683_vm3, %v1083_v1  ;;  %vm1060_vm11 = vcmp.eq.s32.totalorder %v1020_v2, 1 }
 0x1e0   : > { %v1044_v5 = vpop.permute.xlu1 %1043  ;;  %v1076_v6 = vsel %vm1060_vm11, %v964_v0, %v980_v63 }
 0x1e1   : > { %vm1068_vm12 = vcmp.eq.s32.totalorder %v1044_v5, 1  ;;  %1581 = vmatmul.mubr.msk.f32.gmra.mrb[2].mxu0 %vm683_vm3, %v1076_v6 }
 0x1e2   : > { %v1084_v7 = vsel %vm1068_vm12, %v972_v4, %v988_v3  ;;  %v904_v8 = vpop.permute.xlu0 %903 }
 0x1e3   : > { %1593 = vmatmul.mubr.msk.f32.gmra.mrb[2].mxu1 %vm683_vm3, %v1084_v7  ;;  %v965_v15 = vmul.f32 %v904_v8, %v869_v11 }
 0x1e4   : > { %v944_v9 = vpop.permute.xlu1 %943 }
 0x1e5   : > { %v973_v19 = vmul.f32 %v944_v9, %v877_v13 }
 0x1e6   : > { %v909_v10 = vpop.permute.xlu0 %908 }
 0x1e7   : > { %v966_v25 = vmul.f32 %v909_v10, %v870_v17 }
 0x1e8   : > { %v949_v12 = vpop.permute.xlu1 %948 }
 0x1e9   : > { %v974_v29 = vmul.f32 %v949_v12, %v878_v23 }
 0x1ea   : > { %v1023_v16 = vpop.permute.xlu0 %1022 }
 0x1eb   : > { %vm1061_vm13 = vcmp.eq.s32.totalorder %v1023_v16, 1 }
 0x1ec   : > { %v1047_v21 = vpop.permute.xlu1 %1046  ;;  %v1077_v22 = vsel %vm1061_vm13, %v965_v15, %v981_v14 }
 0x1ed   : > { %vm1069_vm14 = vcmp.eq.s32.totalorder %v1047_v21, 1  ;;  %1583 = vmatprep.mubr.msk.f32.mxu0 %vm683_vm3, %v1077_v22 }
 0x1ee   : > { %v1085_v26 = vsel %vm1069_vm14, %v973_v19, %v989_v18  ;;  %v1026_v27 = vpop.permute.xlu0 %1025 }
 0x1ef   : > { %1595 = vmatprep.mubr.msk.f32.mxu1 %vm683_vm3, %v1085_v26  ;;  %vm1062_vm15 = vcmp.eq.s32.totalorder %v1026_v27, 1 }
 0x1f0   : > { %v1050_v30 = vpop.permute.xlu1 %1049  ;;  %v1078_v31 = vsel %vm1062_vm15, %v966_v25, %v982_v24 }
 0x1f1   : > { %vm1070_vm0 = vcmp.eq.s32.totalorder %v1050_v30, 1  ;;  %1584 = vmatmul.mubr.msk.f32.gmra.mrb[4].mxu0 %vm683_vm3, %v1078_v31 }
 0x1f2   : > { %v1086_v32 = vsel %vm1070_vm0, %v974_v29, %v990_v28  ;;  %v914_v33 = vpop.permute.xlu0 %913 }
 0x1f3   : > { %1596 = vmatmul.mubr.msk.f32.gmra.mrb[4].mxu1 %vm683_vm3, %v1086_v32  ;;  %v967_v39 = vmul.f32 %v914_v33, %v871_v36 }
 0x1f4   : > { %v954_v34 = vpop.permute.xlu1 %953 }
 0x1f5   : > { %v975_v43 = vmul.f32 %v954_v34, %v879_v38 }
 0x1f6   : > { %v919_v35 = vpop.permute.xlu0 %918 }
 0x1f7   : > { %v968_v48 = vmul.f32 %v919_v35, %v872_v41 }
 0x1f8   : > { %v959_v37 = vpop.permute.xlu1 %958 }
 0x1f9   : > { %v976_v52 = vmul.f32 %v959_v37, %v880_v46 }
 0x1fa   : > { %v1029_v40 = vpop.permute.xlu0 %1028 }
 0x1fb   : > { %vm1063_vm1 = vcmp.eq.s32.totalorder %v1029_v40, 1 }
 0x1fc   : > { %v1053_v44 = vpop.permute.xlu1 %1052  ;;  %v1079_v45 = vsel %vm1063_vm1, %v967_v39, %v983_v20 }
 0x1fd   : > { %vm1071_vm2 = vcmp.eq.s32.totalorder %v1053_v44, 1  ;;  %1586 = vmatprep.mubr.msk.f32.mxu0 %vm683_vm3, %v1079_v45 }
 0x1fe   : > { %v1087_v49 = vsel %vm1071_vm2, %v975_v43, %v991_v42  ;;  %v1032_v50 = vpop.permute.xlu0 %1031 }
 0x1ff   : > { %1598 = vmatprep.mubr.msk.f32.mxu1 %vm683_vm3, %v1087_v49  ;;  %vm1064_vm4 = vcmp.eq.s32.totalorder %v1032_v50, 1 }
 0x200   : > { %v1056_v53 = vpop.permute.xlu1 %1055  ;;  %v1080_v54 = vsel %vm1064_vm4, %v968_v48, %v984_v47 }
 0x201   : > { %vm1072_vm5 = vcmp.eq.s32.totalorder %v1056_v53, 1  ;;  %1587 = vmatmul.mubr.msk.f32.gmra.mrb[6].mxu0 %vm683_vm3, %v1080_v54 }
 0x202   : > { %v1088_v55 = vsel %vm1072_vm5, %v976_v52, %v992_v51 }
 0x203   : > { %1599 = vmatmul.mubr.msk.f32.gmra.mrb[6].mxu1 %vm683_vm3, %v1088_v55 }
 0x2a3   : > { %v1579_v57 = vpop.f32.mrb[0].mxu0 }
 0x2a4   : > { %v1220_v58 = vadd.f32 %v1579_v57, %v1477_v56  ;;  %v1214_v59 = vpop.f32.mrb[1].mxu0 }
 0x2a5   : > { %v1215_v60 = vadd.f32 %v1477_v56, %v1214_v59 }
 0x2a6   : > { %v1294_v61 = vmax.f32 %v1220_v58, 0.0 }
 0x2a7   : > { %v1293_v62 = vmax.f32 %v1215_v60, 0.0  ;;  %v1591_v63 = vpop.f32.mrb[0].mxu1 }
 0x2a8   : > { %1310 = vst [vmem:[%s2062_s9 + $0x8] sm:$0xff] %v1294_v61  ;;  %v1260_v0 = vadd.f32 %v1591_v63, %v1477_v56  ;;  %v1254_v1 = vpop.f32.mrb[1].mxu1 }
 0x2a9   : > { %1309 = vst [vmem:[%s2062_s9] sm:$0xff] %v1293_v62  ;;  %v1255_v2 = vadd.f32 %v1477_v56, %v1254_v1 }
 0x2aa   : > { %v1302_v3 = vmax.f32 %v1260_v0, 0.0 }
 0x2ab   : > { %v1301_v4 = vmax.f32 %v1255_v2, 0.0 }
 0x2ac   : > { %1318 = vst [vmem:[%s2062_s9 + $0x48] sm:$0xff] %v1302_v3 }
 0x2ad   : > { %1317 = vst [vmem:[%s2062_s9 + $0x40] sm:$0xff] %v1301_v4 }
 0x2b4   : > { %v1582_v5 = vpop.f32.mrb[2].mxu0 }
 0x2b5   : > { %v1230_v6 = vadd.f32 %v1582_v5, %v1477_v56  ;;  %v1224_v7 = vpop.f32.mrb[3].mxu0 }
 0x2b6   : > { %v1594_v8 = vpop.f32.mrb[2].mxu1  ;;  %v1225_v9 = vadd.f32 %v1477_v56, %v1224_v7 }
 0x2b7   : > { %v1296_v10 = vmax.f32 %v1230_v6, 0.0  ;;  %v1270_v11 = vadd.f32 %v1594_v8, %v1477_v56  ;;  %v1264_v12 = vpop.f32.mrb[3].mxu1 }
 0x2b8   : > { %v1295_v13 = vmax.f32 %v1225_v9, 0.0  ;;  %v1265_v14 = vadd.f32 %v1477_v56, %v1264_v12 }
 0x2b9   : > { %1312 = vst [vmem:[%s2062_s9 + $0x18] sm:$0xff] %v1296_v10  ;;  %v1304_v15 = vmax.f32 %v1270_v11, 0.0 }
 0x2ba   : > { %1311 = vst [vmem:[%s2062_s9 + $0x10] sm:$0xff] %v1295_v13  ;;  %v1303_v16 = vmax.f32 %v1265_v14, 0.0 }
 0x2bb   : > { %1320 = vst [vmem:[%s2062_s9 + $0x58] sm:$0xff] %v1304_v15 }
 0x2bc   : > { %1319 = vst [vmem:[%s2062_s9 + $0x50] sm:$0xff] %v1303_v16 }
 0x2c4   : > { %v1585_v17 = vpop.f32.mrb[4].mxu0 }
 0x2c5   : > { %v1240_v18 = vadd.f32 %v1585_v17, %v1477_v56  ;;  %v1234_v19 = vpop.f32.mrb[5].mxu0 }
 0x2c6   : > { %v1597_v21 = vpop.f32.mrb[4].mxu1  ;;  %v1235_v22 = vadd.f32 %v1477_v56, %v1234_v19 }
 0x2c7   : > { %v1298_v23 = vmax.f32 %v1240_v18, 0.0  ;;  %v1280_v24 = vadd.f32 %v1597_v21, %v1477_v56  ;;  %v1274_v25 = vpop.f32.mrb[5].mxu1 }
 0x2c8   : > { %v1297_v26 = vmax.f32 %v1235_v22, 0.0  ;;  %v1275_v27 = vadd.f32 %v1477_v56, %v1274_v25 }
 0x2c9   : > { %1314 = vst [vmem:[%s2062_s9 + $0x28] sm:$0xff] %v1298_v23  ;;  %v1306_v28 = vmax.f32 %v1280_v24, 0.0 }
 0x2ca   : > { %1313 = vst [vmem:[%s2062_s9 + $0x20] sm:$0xff] %v1297_v26  ;;  %v1305_v29 = vmax.f32 %v1275_v27, 0.0 }
 0x2cb   : > { %1322 = vst [vmem:[%s2062_s9 + $0x68] sm:$0xff] %v1306_v28 }
 0x2cc   : > { %1321 = vst [vmem:[%s2062_s9 + $0x60] sm:$0xff] %v1305_v29 }
 0x2d4   : > { %v1588_v30 = vpop.f32.mrb[6].mxu0 }
 0x2d5   : > { %v1250_v31 = vadd.f32 %v1588_v30, %v1477_v56  ;;  %v1244_v32 = vpop.f32.mrb[7].mxu0 }
 0x2d6   : > { %v1600_v33 = vpop.f32.mrb[6].mxu1  ;;  %v1245_v34 = vadd.f32 %v1477_v56, %v1244_v32 }
 0x2d7   : > { %v1300_v35 = vmax.f32 %v1250_v31, 0.0  ;;  %v1290_v36 = vadd.f32 %v1600_v33, %v1477_v56  ;;  %v1284_v37 = vpop.f32.mrb[7].mxu1 }
 0x2d8   : > { %v1299_v38 = vmax.f32 %v1245_v34, 0.0  ;;  %v1285_v20 = vadd.f32 %v1477_v56, %v1284_v37 }
 0x2d9   : > { %1316 = vst [vmem:[%s2062_s9 + $0x38] sm:$0xff] %v1300_v35  ;;  %v1308_v39 = vmax.f32 %v1290_v36, 0.0 }
 0x2da   : > { %1315 = vst [vmem:[%s2062_s9 + $0x30] sm:$0xff] %v1299_v38  ;;  %v1307_v40 = vmax.f32 %v1285_v20, 0.0 }
 0x2db   : > { %1324 = vst [vmem:[%s2062_s9 + $0x78] sm:$0xff] %v1308_v39 }
 0x2dc   : > { %1323 = vst [vmem:[%s2062_s9 + $0x70] sm:$0xff] %v1307_v40 }
 0x2dd PF: > { %s1500_s10 = sshll.u32 %s1876_s24, 11  ;;  %s1339_s0 = sshll.u32 %s2062_s9, 4  ;;  %s2290_s0 = int_to_ptr.vmem [resolvable:$true] %s1339_s0 }
 0x2de   : > { %s2287_s6 = scalar_lea.hbm %s2357_s5, %s1500_s10  ;;  %s2370_s23 = sand.u32 1, %s1856_s19  }
 0x2df   : > { %s2294_s26 = scalar_lea.sflag [#allocation6], %s2370_s23  ;;  %s1778_s30 = scalar_lea.vmem %s2290_s0, 2048 }
 0x2e0   : > { %p1779_p8 = scmp.ne.s32.totalorder %s2290_s0, %s1778_s30  ;;  %s1892_s24 = smov [#allocation5]  }
 0x2e1   : > { %s1782_s17 = sshll.u32 %s1892_s24, 4  ;;  %s1783_s17 = int_to_ptr.vmem [resolvable:$false] %s1782_s17 }
 0x2e2   : > { %p1780_p9 = pnand %p1779_p8, %p1997_p7  ;;  %s1784_s28 = scalar_lea.vmem %s1783_s17, 4096 }
 0x2e3   : > { %p1785_p11 = scmp.lt.s32.totalorder %s2290_s0, %s1783_s17  ;;  %p1786_p13 = scmp.lt.s32.totalorder %s1784_s28, %s1778_s30 }
 0x2e4   : > { %p1781_p10 = pneg %p1780_p9 }
 0x2e5   : > { %p1787_p0 = por %p1786_p13, %p1785_p11 }
 0x2e7   : > { %p1788_p1 = pnand %p1787_p0, %p1781_p10 }
 0x2e9   : > { %1791 = shalt.err (!%p1788_p1)
}
 0x2ea   : > { %s1792_s9 = scalar_lea.hbm %s2287_s6, 2048  ;;  %s1796_s12 = scalar_lea.hbm %s2357_s5, 4096 }
 0x2eb   : > { %p1793_p2 = scmp.ne.s32.totalorder %s2287_s6, %s1792_s9  ;;  %p1797_p5 = scmp.lt.u32.totalorder %s2287_s6, %s2357_s5 }
 0x2ec   : > { %p1798_p6 = scmp.lt.u32.totalorder %s1796_s12, %s1792_s9  ;;  %p1800_p9 = scmp.lt.u32.totalorder %s1792_s9, %s2287_s6 }
 0x2ed   : > { %p1794_p3 = pnand %p1793_p2, %p1997_p7 }
 0x2ee   : > { %p1799_p8 = por %p1798_p6, %p1797_p5 }
 0x2ef   : > { %p1795_p4 = pneg %p1794_p3 }
 0x2f0   : > { %p1801_p10 = por %p1800_p9, %p1799_p8 }
 0x2f2   : > { %p1802_p11 = pnand %p1801_p10, %p1795_p4 }
 0x2f4   : > { %1805 = shalt.err (!%p1802_p11)
}
 0x2f5   : > { %s1893_s7 = smov 128   ;;  %s1894_s21 = smov 8  }
 0x2f6   : > { %1629 = dma.vmem_to_hbm [thread:$0]  (%p1997_p7), %s2290_s0, 2048, %s2287_s6, %s2294_s26, %s1893_s7, %s1893_s7, %s1894_s21  }
 0x2f7 PF: > { %p1635_p13 = scmp.ge.s32.totalorder %s1888_s27, 2  ;;  %s1354_s23 = sand.u32 1, %s1852_s18  }
 0x2f8   : > { %s1355_s30 = scalar_lea.sflag [#allocation6], %s1354_s23 }
 0x2f9   : > { %p1632_p0 = pnand %p1635_p13, %p2005_p12 }
 0x2fb   : > { %1847 = dma.done.wait (!%p1632_p0), %s1355_s30, 2048  }
 0x2fc   : > { %1849 = vsyncadd (!%p1632_p0), %s1355_s30, 4294965248  ;;  %s18_s27 = sadd.s32 1, %s1888_s27   ;;  %s2371_s24 = sld [smem:[#allocation8_spill]] }
 0x2fd   : > { %p15_p1 = scmp.ge.s32.totalorder %s18_s27, 6   ;;  %s2372_s11 = sld [smem:[#allocation9_spill]] }
 0x2fe   : > { %s2373_s26 = sld [smem:[#allocation10_spill]]  ;;  %s2374_s18 = smov %s1856_s19 }
 0x2ff   : > { %s2375_s19 = smov %s1860_s20  ;;  %s2376_s20 = smov %s2010_s15 }
 0x300   : > { %s2377_s21 = smov %s1868_s22  ;;  %s2378_s22 = smov %s2013_s16 }
 0x301   : > { %s2379_s23 = smov %s1880_s25  ;;  %17 = sbr.rel (!%p15_p1) target bundleno = 8 (0x8), region = 135 }
 0x303   : > { %s2380_s25 = smov %s2372_s11 }
 0x308   :  { %1360 = vsyncpa [#allocation6], 1 }
 0x309   :  { %1362 = vsyncpa [#allocation6 + $0x1], 1 }

</bundles_post_ra>
